<compile_context>
chip_gen: v6e
topology: v6e:2x2x1
jax: 0.10.0
libtpu: 0.0.40
codegen_flags: <defaults>
</compile_context>

<pallas_src>
import functools

import jax
import jax.numpy as jnp
from jax.experimental import pallas as pl
from jax.experimental.pallas import tpu as pltpu


def identity_kernel(x_ref, wc_ref, bc_ref, w1_ref, b1_ref,
                    w2_ref, b2_ref, w3_ref, b3_ref, o_ref):
    x = x_ref[...]                                   # (tb, S, E) f32
    wc = wc_ref[...]                                 # (1, E)

    # conv1: per-(b, s) dot over E.  VPU multiply + lane reduce -> (tb, S)
    # directly in row layout (no column->row relayout needed).
    h = jnp.sum(x * wc[None, :, :], axis=-1) + bc_ref[...]   # (tb, S) + (1, 1)
    h = jnp.maximum(h, 0.0)

    # fc1 + ReLU   (dropout p=0.0 -> identity)
    h1 = jnp.dot(h, w1_ref[...], preferred_element_type=jnp.float32) + b1_ref[...]
    h1 = jnp.maximum(h1, 0.0)                                 # (tb, 512)

    # fc2 + ReLU   (dropout p=0.0 -> identity)
    h2 = jnp.dot(h1, w2_ref[...], preferred_element_type=jnp.float32) + b2_ref[...]
    h2 = jnp.maximum(h2, 0.0)                                 # (tb, h_dim)

    # fc3 (lane-dense padded output; true out_dim sliced outside the kernel)
    o_ref[...] = jnp.dot(h2, w3_ref[...], preferred_element_type=jnp.float32) + b3_ref[...]


def _batch_tile(B):
    # Output block's second-to-last dim must equal B or be a multiple of 8.
    # Cap the tile so x tiles + weights stay well inside VMEM as B grows.
    if B <= 8:
        return B
    return min(256, (B // 8) * 8)


@jax.jit
def identity_forward(x, params):
    """x: (B, S, E) float32.  params: dict of weights stored as (in, out)."""
    B, S, E = x.shape
    fc1_dim = params["w1"].shape[1]
    h_dim = params["w2"].shape[1]
    out_dim = params["w3"].shape[1]

    # Pad the last layer to a multiple of 128 lanes -> unmasked writeback.
    out_pad = 128 * pl.cdiv(out_dim, 128)
    w3p = jnp.pad(params["w3"], ((0, 0), (0, out_pad - out_dim)))
    b3p = jnp.pad(params["b3"], ((0, 0), (0, out_pad - out_dim)))

    tb = _batch_tile(B)
    grid = (pl.cdiv(B, tb),)

    out_padded = pl.pallas_call(
        identity_kernel,
        out_shape=jax.ShapeDtypeStruct((B, out_pad), jnp.float32),
        grid=grid,
        in_specs=[
            pl.BlockSpec((tb, S, E), lambda i: (i, 0, 0)),        # x tile
            pl.BlockSpec((1, E), lambda i: (0, 0)),               # conv weight
            pl.BlockSpec((1, 1), lambda i: (0, 0)),               # conv bias
            pl.BlockSpec((S, fc1_dim), lambda i: (0, 0)),         # w1
            pl.BlockSpec((1, fc1_dim), lambda i: (0, 0)),         # b1
            pl.BlockSpec((fc1_dim, h_dim), lambda i: (0, 0)),     # w2
            pl.BlockSpec((1, h_dim), lambda i: (0, 0)),           # b2
            pl.BlockSpec((h_dim, out_pad), lambda i: (0, 0)),     # w3 (padded)
            pl.BlockSpec((1, out_pad), lambda i: (0, 0)),         # b3 (padded)
        ],
        out_specs=pl.BlockSpec((tb, out_pad), lambda i: (i, 0)),
        compiler_params=pltpu.CompilerParams(
            dimension_semantics=("parallel",)),
    )(x, params["wc"], params["bc"],
      params["w1"], params["b1"],
      params["w2"], params["b2"],
      w3p, b3p)

    return out_padded[:, :out_dim]


def identity_reference(x, params):
    """Pure-JAX reference of the same forward pass (for correctness check)."""
    h = jnp.maximum(jnp.einsum("bse,e->bs", x, params["wc"][0])
                    + params["bc"][0, 0], 0.0)
    h1 = jnp.maximum(h @ params["w1"] + params["b1"], 0.0)
    h2 = jnp.maximum(h1 @ params["w2"] + params["b2"], 0.0)
    return h2 @ params["w3"] + params["b3"]


def make_params(key, seq_len, e_dim, fc1_dim, h_dim, out_dim):
    ks = jax.random.split(key, 8)
    s = 0.05
    return {
        # Conv2d(1, 1, (1, E)): weight (1,1,1,E) -> stored as (1, E); bias -> (1, 1)
        "wc": s * jax.random.normal(ks[0], (1, e_dim), jnp.float32),
        "bc": s * jax.random.normal(ks[1], (1, 1), jnp.float32),
        # nn.Linear(in, out): PyTorch stores W as (out, in); we store transposed (in, out)
        "w1": s * jax.random.normal(ks[2], (seq_len, fc1_dim), jnp.float32),
        "b1": s * jax.random.normal(ks[3], (1, fc1_dim), jnp.float32),
        "w2": s * jax.random.normal(ks[4], (fc1_dim, h_dim), jnp.float32),
        "b2": s * jax.random.normal(ks[5], (1, h_dim), jnp.float32),
        "w3": s * jax.random.normal(ks[6], (h_dim, out_dim), jnp.float32),
        "b3": s * jax.random.normal(ks[7], (1, out_dim), jnp.float32),
    }


if __name__ == "__main__":
    B = 2          # batch
    SEQ_LEN = 16   # gene_num + 1 (small synthetic value)
    E = 200        # input width, fixed by Conv2d(1, 1, (1, 200))
    FC1 = 512
    H_DIM = 100
    OUT_DIM = 10

    key = jax.random.PRNGKey(0)
    kx, kp = jax.random.split(key)
    x = jax.random.normal(kx, (B, SEQ_LEN, E), jnp.float32)
    params = make_params(kp, SEQ_LEN, E, FC1, H_DIM, OUT_DIM)

    out = identity_forward(x, params)
    out = jax.block_until_ready(out)

    ref = identity_reference(x, params)
    assert out.shape == (B, OUT_DIM), f"bad shape {out.shape}"
    assert jnp.allclose(out, ref, atol=1e-4, rtol=1e-4), "mismatch vs reference"

    print("KERNEL_OK")
</pallas_src>

<mosaic_0001>
module attributes {stable_mosaic.version = 11 : i64} {
  func.func @identity_kernel(%arg0: i32, %arg1: memref<2x16x200xf32, #tpu.memory_space<vmem>>, %arg2: memref<1x200xf32, #tpu.memory_space<vmem>>, %arg3: memref<1x1xf32, #tpu.memory_space<vmem>>, %arg4: memref<16x512xf32, #tpu.memory_space<vmem>>, %arg5: memref<1x512xf32, #tpu.memory_space<vmem>>, %arg6: memref<512x100xf32, #tpu.memory_space<vmem>>, %arg7: memref<1x100xf32, #tpu.memory_space<vmem>>, %arg8: memref<100x128xf32, #tpu.memory_space<vmem>>, %arg9: memref<1x128xf32, #tpu.memory_space<vmem>>, %arg10: memref<2x128xf32, #tpu.memory_space<vmem>>) attributes {dimension_semantics = [#tpu.dimension_semantics<parallel>], iteration_bounds = array<i64: 1>, scalar_prefetch = 0 : i64, scratch_operands = 0 : i64, tpu.core_type = #tpu.core_type<tc>, window_params = [{transform_indices = @transform_0, window_bounds = array<i64: 2, 16, 200>}, {pipeline_mode = #tpu.pipeline_mode<synchronous>, transform_indices = @transform_1, window_bounds = array<i64: 1, 200>}, {pipeline_mode = #tpu.pipeline_mode<synchronous>, transform_indices = @transform_2, window_bounds = array<i64: 1, 1>}, {pipeline_mode = #tpu.pipeline_mode<synchronous>, transform_indices = @transform_3, window_bounds = array<i64: 16, 512>}, {pipeline_mode = #tpu.pipeline_mode<synchronous>, transform_indices = @transform_4, window_bounds = array<i64: 1, 512>}, {pipeline_mode = #tpu.pipeline_mode<synchronous>, transform_indices = @transform_5, window_bounds = array<i64: 512, 100>}, {pipeline_mode = #tpu.pipeline_mode<synchronous>, transform_indices = @transform_6, window_bounds = array<i64: 1, 100>}, {pipeline_mode = #tpu.pipeline_mode<synchronous>, transform_indices = @transform_7, window_bounds = array<i64: 100, 128>}, {pipeline_mode = #tpu.pipeline_mode<synchronous>, transform_indices = @transform_8, window_bounds = array<i64: 1, 128>}, {transform_indices = @transform_9, window_bounds = array<i64: 2, 128>}]} {
    %c0 = arith.constant 0 : index
    %c0_0 = arith.constant 0 : index
    %c0_1 = arith.constant 0 : index
    %0 = vector.load %arg1[%c0, %c0_0, %c0_1] : memref<2x16x200xf32, #tpu.memory_space<vmem>>, vector<2x16x200xf32>
    %c0_2 = arith.constant 0 : index
    %c0_3 = arith.constant 0 : index
    %1 = vector.load %arg2[%c0_2, %c0_3] : memref<1x200xf32, #tpu.memory_space<vmem>>, vector<1x200xf32>
    %2 = vector.shape_cast %1 : vector<1x200xf32> to vector<1x1x200xf32>
    %3 = vector.broadcast %2 : vector<1x1x200xf32> to vector<2x16x200xf32>
    %4 = arith.mulf %0, %3 : vector<2x16x200xf32>
    %cst = arith.constant dense<0.000000e+00> : vector<2x16xf32>
    %5 = vector.multi_reduction <add>, %4, %cst [2] : vector<2x16x200xf32> to vector<2x16xf32>
    %c0_4 = arith.constant 0 : index
    %c0_5 = arith.constant 0 : index
    %6 = vector.load %arg3[%c0_4, %c0_5] : memref<1x1xf32, #tpu.memory_space<vmem>>, vector<1x1xf32>
    %7 = vector.broadcast %6 : vector<1x1xf32> to vector<2x16xf32>
    %8 = arith.addf %5, %7 : vector<2x16xf32>
    %cst_6 = arith.constant 0.000000e+00 : f32
    %9 = vector.broadcast %cst_6 : f32 to vector<2x16xf32>
    %10 = arith.maximumf %8, %9 : vector<2x16xf32>
    %c0_7 = arith.constant 0 : index
    %c0_8 = arith.constant 0 : index
    %11 = vector.load %arg4[%c0_7, %c0_8] : memref<16x512xf32, #tpu.memory_space<vmem>>, vector<16x512xf32>
    %cst_9 = arith.constant dense<0.000000e+00> : vector<2x512xf32>
    %12 = tpu.matmul %10, %11, %cst_9 {dimension_numbers = #tpu.dot_dimension_numbers<[1], [0], [0], [1], [0, 0, 1, 1], [], []>} : vector<2x16xf32>, vector<16x512xf32>, vector<2x512xf32> -> vector<2x512xf32>
    %c0_10 = arith.constant 0 : index
    %c0_11 = arith.constant 0 : index
    %13 = vector.load %arg5[%c0_10, %c0_11] : memref<1x512xf32, #tpu.memory_space<vmem>>, vector<1x512xf32>
    %14 = vector.broadcast %13 : vector<1x512xf32> to vector<2x512xf32>
    %15 = arith.addf %12, %14 : vector<2x512xf32>
    %cst_12 = arith.constant 0.000000e+00 : f32
    %16 = vector.broadcast %cst_12 : f32 to vector<2x512xf32>
    %17 = arith.maximumf %15, %16 : vector<2x512xf32>
    %c0_13 = arith.constant 0 : index
    %c0_14 = arith.constant 0 : index
    %18 = vector.load %arg6[%c0_13, %c0_14] : memref<512x100xf32, #tpu.memory_space<vmem>>, vector<512x100xf32>
    %cst_15 = arith.constant dense<0.000000e+00> : vector<2x100xf32>
    %19 = tpu.matmul %17, %18, %cst_15 {dimension_numbers = #tpu.dot_dimension_numbers<[1], [0], [0], [1], [0, 0, 1, 1], [], []>} : vector<2x512xf32>, vector<512x100xf32>, vector<2x100xf32> -> vector<2x100xf32>
    %c0_16 = arith.constant 0 : index
    %c0_17 = arith.constant 0 : index
    %20 = vector.load %arg7[%c0_16, %c0_17] : memref<1x100xf32, #tpu.memory_space<vmem>>, vector<1x100xf32>
    %21 = vector.broadcast %20 : vector<1x100xf32> to vector<2x100xf32>
    %22 = arith.addf %19, %21 : vector<2x100xf32>
    %cst_18 = arith.constant 0.000000e+00 : f32
    %23 = vector.broadcast %cst_18 : f32 to vector<2x100xf32>
    %24 = arith.maximumf %22, %23 : vector<2x100xf32>
    %c0_19 = arith.constant 0 : index
    %c0_20 = arith.constant 0 : index
    %25 = vector.load %arg8[%c0_19, %c0_20] : memref<100x128xf32, #tpu.memory_space<vmem>>, vector<100x128xf32>
    %cst_21 = arith.constant dense<0.000000e+00> : vector<2x128xf32>
    %26 = tpu.matmul %24, %25, %cst_21 {dimension_numbers = #tpu.dot_dimension_numbers<[1], [0], [0], [1], [0, 0, 1, 1], [], []>} : vector<2x100xf32>, vector<100x128xf32>, vector<2x128xf32> -> vector<2x128xf32>
    %c0_22 = arith.constant 0 : index
    %c0_23 = arith.constant 0 : index
    %27 = vector.load %arg9[%c0_22, %c0_23] : memref<1x128xf32, #tpu.memory_space<vmem>>, vector<1x128xf32>
    %28 = vector.broadcast %27 : vector<1x128xf32> to vector<2x128xf32>
    %29 = arith.addf %26, %28 : vector<2x128xf32>
    %c0_24 = arith.constant 0 : index
    %c0_25 = arith.constant 0 : index
    %30 = vector.load %arg10[%c0_24, %c0_25] : memref<2x128xf32, #tpu.memory_space<vmem>>, vector<2x128xf32>
    tpu.vector_store %arg10[%c0_24, %c0_25], %29 {strides = array<i32>} : memref<2x128xf32, #tpu.memory_space<vmem>>, vector<2x128xf32>,
    return
  }
  func.func @transform_0(%arg0: i32) -> (i32, i32, i32) {
    %c0_i32 = arith.constant 0 : i32
    %c0_i32_0 = arith.constant 0 : i32
    %c0_i32_1 = arith.constant 0 : i32
    return %arg0, %c0_i32, %c0_i32_0 : i32, i32, i32
  }
  func.func @transform_1(%arg0: i32) -> (i32, i32) {
    %c0_i32 = arith.constant 0 : i32
    %c0_i32_0 = arith.constant 0 : i32
    %c0_i32_1 = arith.constant 0 : i32
    return %c0_i32, %c0_i32_0 : i32, i32
  }
  func.func @transform_2(%arg0: i32) -> (i32, i32) {
    %c0_i32 = arith.constant 0 : i32
    %c0_i32_0 = arith.constant 0 : i32
    %c0_i32_1 = arith.constant 0 : i32
    return %c0_i32, %c0_i32_0 : i32, i32
  }
  func.func @transform_3(%arg0: i32) -> (i32, i32) {
    %c0_i32 = arith.constant 0 : i32
    %c0_i32_0 = arith.constant 0 : i32
    %c0_i32_1 = arith.constant 0 : i32
    return %c0_i32, %c0_i32_0 : i32, i32
  }
  func.func @transform_4(%arg0: i32) -> (i32, i32) {
    %c0_i32 = arith.constant 0 : i32
    %c0_i32_0 = arith.constant 0 : i32
    %c0_i32_1 = arith.constant 0 : i32
    return %c0_i32, %c0_i32_0 : i32, i32
  }
  func.func @transform_5(%arg0: i32) -> (i32, i32) {
    %c0_i32 = arith.constant 0 : i32
    %c0_i32_0 = arith.constant 0 : i32
    %c0_i32_1 = arith.constant 0 : i32
    return %c0_i32, %c0_i32_0 : i32, i32
  }
  func.func @transform_6(%arg0: i32) -> (i32, i32) {
    %c0_i32 = arith.constant 0 : i32
    %c0_i32_0 = arith.constant 0 : i32
    %c0_i32_1 = arith.constant 0 : i32
    return %c0_i32, %c0_i32_0 : i32, i32
  }
  func.func @transform_7(%arg0: i32) -> (i32, i32) {
    %c0_i32 = arith.constant 0 : i32
    %c0_i32_0 = arith.constant 0 : i32
    %c0_i32_1 = arith.constant 0 : i32
    return %c0_i32, %c0_i32_0 : i32, i32
  }
  func.func @transform_8(%arg0: i32) -> (i32, i32) {
    %c0_i32 = arith.constant 0 : i32
    %c0_i32_0 = arith.constant 0 : i32
    %c0_i32_1 = arith.constant 0 : i32
    return %c0_i32, %c0_i32_0 : i32, i32
  }
  func.func @transform_9(%arg0: i32) -> (i32, i32) {
    %c0_i32 = arith.constant 0 : i32
    %c0_i32_0 = arith.constant 0 : i32
    return %arg0, %c0_i32 : i32, i32
  }
}

</mosaic_0001>

<bundles_post_ra>
// kernel: identity_forward.1
= control target key start
LH: loop header
LB: loop body
LE: loop exit
PB: predicated region body
PF: predicated region fallthrough
CT: control target
= control target key end

     0   :  { %s1162_s0 = inlined_call_operand.vmem [shape: f32[2,16,200], index: 0, kind: input, shape index: {}]   ;;  %s1163_s1 = inlined_call_operand.vmem [shape: f32[1,200], index: 1, kind: input, shape index: {}]   ;;  %s1164_s2 = inlined_call_operand.<no memory space> [shape: f32[1,1], index: 2, kind: input, shape index: {}]   ;;  %s1165_s3 = inlined_call_operand.vmem [shape: f32[16,512], index: 3, kind: input, shape index: {}]   ;;  %s1166_s4 = inlined_call_operand.vmem [shape: f32[1,512], index: 4, kind: input, shape index: {}]   ;;  %s1167_s5 = inlined_call_operand.vmem [shape: f32[512,100], index: 5, kind: input, shape index: {}]   ;;  %s1168_s6 = inlined_call_operand.vmem [shape: f32[1,100], index: 6, kind: input, shape index: {}]   ;;  %s1169_s7 = inlined_call_operand.vmem [shape: f32[100,128], index: 7, kind: input, shape index: {}]   ;;  %s1170_s8 = inlined_call_operand.vmem [shape: f32[1,128], index: 8, kind: input, shape index: {}]   ;;  %s1171_s9 = inlined_call_operand.hbm [shape: f32[2,128], index: 9, kind: output, shape index: {}]  }
   0x1   :  { %v14_v0 = vstv %s1164_s2 }
   0x2   :  { %15 = vst [vmem:[#allocation2] sm:$0x1] %v14_v0 }
   0x3   :  { %v45_v1 = vlaneseq  ;;  %v777_v2 = vmov 0   ;;  %v43_v4 = vld [vmem:[%s1163_s1] sm:$0x3] }
   0x4   :  { %754 = vset.pattern.permute.xlu0 %v777_v2 }
   0x5   :  { %v835_v3 = vshrl.u32 %v45_v1, 7 }
   0x6   :  { %16 = vsyncpa [#allocation4], 0  ;;  %v35_v5 = vld [vmem:[%s1162_s0] sm:$0xff]  ;;  %v36_v8 = vld [vmem:[%s1162_s0 + $0x8] sm:$0xff]  ;;  %vm63_vm0 = vcmask 588800   ;;  %v778_v38 = vmov 0.0  }
   0x7   :  { %v47_v6 = vsub.s32 0, %v835_v3  ;;  %v51_v7 = vsub.s32 1, %v835_v3  ;;  %v37_v9 = vld [vmem:[%s1162_s0 + $0x10] sm:$0xff]  ;;  %v38_v10 = vld [vmem:[%s1162_s0 + $0x18] sm:$0xff]  ;;  %v39_v13 = vld [vmem:[%s1162_s0 + $0x20] sm:$0xff]  ;;  %223 = vmatprep.mubr.f32.mxu1 %v778_v38  ;;  %vm143_vm1 = vcmask 130112  }
   0x8   :  { %v40_v14 = vld [vmem:[%s1162_s0 + $0x28] sm:$0xff]  ;;  %v42_v15 = vld [vmem:[%s1162_s0 + $0x38] sm:$0xff]  ;;  %v41_v16 = vld [vmem:[%s1162_s0 + $0x30] sm:$0xff]  ;;  %vm154_vm2 = vcmask 1041409   ;;  %vm156_vm3 = vcmask 130048   ;;  %vm541_vm4 = vcmask 1043456  }
   0x9   :  { %v48_v11 = vrot.slane %v43_v4, %v47_v6  ;;  %v52_v12 = vrot.slane %v43_v4, %v51_v7  ;;  %v630_v33 = vld [vmem:[#allocation2] ss:$0 sm:$0xff]  ;;  %v103_v34 = vld [vmem:[%s1165_s3 + $0x28] sm:$0xff]  ;;  %v105_v39 = vld [vmem:[%s1165_s3 + $0x38] sm:$0xff]  ;;  %v133_v4 = vand.u32 127, %v45_v1  ;;  %vm779_vm5 = vmmov 0  }
   0xa   :  { %187 = vmatprep.subr.mxu1 %v103_v34  ;;  %v102_v35 = vld [vmem:[%s1165_s3 + $0x20] sm:$0xff]  ;;  %v99_v36 = vld [vmem:[%s1165_s3 + $0x8] sm:$0xff]  ;;  %v336_v40 = vld [vmem:[%s1167_s5 + $0xf8] sm:$0xff]  ;;  %vm537_vm6 = vcmask 818176   ;;  %s780_s25 = smov [#allocation3]  }
   0xb   :  { %v55_v17 = vmul.f32 %v48_v11, %v35_v5  ;;  %v56_v18 = vmul.f32 %v52_v12, %v36_v8  ;;  %v58_v19 = vmul.f32 %v52_v12, %v38_v10  ;;  %v57_v20 = vmul.f32 %v48_v11, %v37_v9  ;;  %v98_v37 = vld [vmem:[%s1165_s3] sm:$0xff]  ;;  %188 = vmatpush1.msra.mxu1 %v102_v35  ;;  %v320_v41 = vld [vmem:[%s1167_s5 + $0x78] sm:$0xff]  ;;  %v335_v42 = vld [vmem:[%s1167_s5 + $0xf0] sm:$0xff]  ;;  %s622_s26 = sshll.u32 %s780_s25, 4  ;;  %s623_s26 = int_to_ptr.vmem [resolvable:$true] %s622_s26 }
   0xc   :  { %v59_v21 = vmul.f32 %v48_v11, %v39_v13  ;;  %v60_v22 = vmul.f32 %v52_v12, %v40_v14  ;;  %v62_v23 = vmul.f32 %v52_v12, %v42_v15  ;;  %v61_v26 = vmul.f32 %v48_v11, %v41_v16  ;;  %189 = vmatprep.subr.mxu1 %v99_v36  ;;  %v319_v43 = vld [vmem:[%s1167_s5 + $0x70] sm:$0xff]  ;;  %v334_v44 = vld [vmem:[%s1167_s5 + $0xe8] sm:$0xff]  ;;  %v333_v46 = vld [vmem:[%s1167_s5 + $0xe0] sm:$0xff]  ;;  %p760_p1 = scmp.lt.s32.totalorder %s623_s26, %s623_s26 }
   0xd   :  { %v64_v24 = vsel %vm63_vm0, %v56_v18, 0.0  ;;  %v68_v25 = vsel %vm63_vm0, %v58_v19, 0.0  ;;  %190 = vmatpush1.msra.mxu1 %v98_v37  ;;  %637 = vmatprep.subr.mxu0 %v336_v40  ;;  %v318_v45 = vld [vmem:[%s1167_s5 + $0x68] sm:$0xff]  ;;  %v317_v47 = vld [vmem:[%s1167_s5 + $0x60] sm:$0xff]  ;;  %v332_v48 = vld [vmem:[%s1167_s5 + $0xd8] sm:$0xff]  ;;  %v138_v8 = vadd.s32 4294967288, %v133_v4  ;;  %v136_v10 = vsub.s32 %v133_v4, %v835_v3 }
   0xe   :  { %v65_v27 = vadd.f32 %v64_v24, %v55_v17  ;;  %v72_v28 = vsel %vm63_vm0, %v60_v22, 0.0  ;;  %v76_v29 = vsel %vm63_vm0, %v62_v23, 0.0  ;;  %v69_v31 = vadd.f32 %v68_v25, %v57_v20  ;;  %258 = vmatprep.subr.mxu1 %v105_v39  ;;  %638 = vmatpush3.msra.mxu0 %v320_v41  ;;  %v316_v49 = vld [vmem:[%s1167_s5 + $0x58] sm:$0xff]  ;;  %v331_v50 = vld [vmem:[%s1167_s5 + $0xd0] sm:$0xff]  ;;  %v330_v52 = vld [vmem:[%s1167_s5 + $0xc8] sm:$0xff] }
   0xf   :  { %v73_v30 = vadd.f32 %v72_v28, %v59_v21  ;;  %v77_v32 = vadd.f32 %v76_v29, %v61_v26  ;;  %639 = vmatprep.subr.mxu0 %v335_v42  ;;  %v315_v51 = vld [vmem:[%s1167_s5 + $0x50] sm:$0xff]  ;;  %v314_v53 = vld [vmem:[%s1167_s5 + $0x48] sm:$0xff]  ;;  %v329_v54 = vld [vmem:[%s1167_s5 + $0xc0] sm:$0xff]  ;;  %v141_v11 = vsub.s32 %v138_v8, %v835_v3 }
  0x10   :  { %66 = vadd.xlane.f32.xlu0 %v65_v27  ;;  %640 = vmatpush3.msra.mxu0 %v319_v43  ;;  %v313_v55 = vld [vmem:[%s1167_s5 + $0x40] sm:$0xff]  ;;  %v328_v56 = vld [vmem:[%s1167_s5 + $0xb8] sm:$0xff]  ;;  %v327_v58 = vld [vmem:[%s1167_s5 + $0xb0] sm:$0xff] }
  0x11   :  { %74 = vadd.xlane.f32.xlu1 %v73_v30  ;;  %641 = vmatprep.subr.mxu0 %v334_v44  ;;  %v312_v57 = vld [vmem:[%s1167_s5 + $0x38] sm:$0xff]  ;;  %v311_v59 = vld [vmem:[%s1167_s5 + $0x30] sm:$0xff]  ;;  %v326_v60 = vld [vmem:[%s1167_s5 + $0xa8] sm:$0xff] }
  0x12   :  { %642 = vmatpush3.msra.mxu0 %v318_v45  ;;  %v310_v61 = vld [vmem:[%s1167_s5 + $0x28] sm:$0xff]  ;;  %v325_v62 = vld [vmem:[%s1167_s5 + $0xa0] sm:$0xff]  ;;  %v104_v26 = vld [vmem:[%s1165_s3 + $0x30] sm:$0xff] }
  0x13   :  { %643 = vmatprep.subr.mxu0 %v333_v46  ;;  %v309_v63 = vld [vmem:[%s1167_s5 + $0x20] sm:$0xff]  ;;  %v101_v28 = vld [vmem:[%s1165_s3 + $0x18] sm:$0xff]  ;;  %v100_v29 = vld [vmem:[%s1165_s3 + $0x10] sm:$0xff] }
  0x14   :  { %70 = vadd.xlane.f32.xlu0 %v69_v31  ;;  %644 = vmatpush3.msra.mxu0 %v317_v47  ;;  %v368_v30 = vld [vmem:[%s1167_s5 + $0x1f8] sm:$0xff]  ;;  %v366_v34 = vld [vmem:[%s1167_s5 + $0x1e8] sm:$0xff]  ;;  %v365_v36 = vld [vmem:[%s1167_s5 + $0x1e0] sm:$0xff] }
  0x15   :  { %78 = vadd.xlane.f32.xlu1 %v77_v32  ;;  %645 = vmatprep.subr.mxu0 %v332_v48  ;;  %v352_v31 = vld [vmem:[%s1167_s5 + $0x178] sm:$0xff]  ;;  %v367_v32 = vld [vmem:[%s1167_s5 + $0x1f0] sm:$0xff]  ;;  %v350_v35 = vld [vmem:[%s1167_s5 + $0x168] sm:$0xff] }
  0x16   :  { %646 = vmatpush3.msra.mxu0 %v316_v49  ;;  %v349_v37 = vld [vmem:[%s1167_s5 + $0x160] sm:$0xff]  ;;  %v364_v39 = vld [vmem:[%s1167_s5 + $0x1d8] sm:$0xff]  ;;  %v363_v41 = vld [vmem:[%s1167_s5 + $0x1d0] sm:$0xff] }
  0x17   :  { %647 = vmatprep.subr.mxu0 %v331_v50  ;;  %v348_v40 = vld [vmem:[%s1167_s5 + $0x158] sm:$0xff]  ;;  %v347_v42 = vld [vmem:[%s1167_s5 + $0x150] sm:$0xff]  ;;  %v362_v43 = vld [vmem:[%s1167_s5 + $0x1c8] sm:$0xff] }
  0x18   :  { %648 = vmatpush3.msra.mxu0 %v315_v51  ;;  %v346_v44 = vld [vmem:[%s1167_s5 + $0x148] sm:$0xff]  ;;  %v361_v45 = vld [vmem:[%s1167_s5 + $0x1c0] sm:$0xff]  ;;  %v360_v47 = vld [vmem:[%s1167_s5 + $0x1b8] sm:$0xff] }
  0x19   :  { %649 = vmatprep.subr.mxu0 %v330_v52  ;;  %v345_v46 = vld [vmem:[%s1167_s5 + $0x140] sm:$0xff]  ;;  %v344_v48 = vld [vmem:[%s1167_s5 + $0x138] sm:$0xff]  ;;  %v359_v49 = vld [vmem:[%s1167_s5 + $0x1b0] sm:$0xff] }
  0x1a   :  { %650 = vmatpush3.msra.mxu0 %v314_v53  ;;  %v343_v50 = vld [vmem:[%s1167_s5 + $0x130] sm:$0xff]  ;;  %v324_v51 = vld [vmem:[%s1167_s5 + $0x98] sm:$0xff]  ;;  %v358_v52 = vld [vmem:[%s1167_s5 + $0x1a8] sm:$0xff] }
  0x1b   :  { %651 = vmatprep.subr.mxu0 %v329_v54  ;;  %v308_v53 = vld [vmem:[%s1167_s5 + $0x18] sm:$0xff]  ;;  %v342_v54 = vld [vmem:[%s1167_s5 + $0x128] sm:$0xff]  ;;  %v339_v4 = vld [vmem:[%s1167_s5 + $0x110] sm:$0xff] }
  0x1c   :  { %652 = vmatpush3.msra.mxu0 %v313_v55  ;;  %v323_v55 = vld [vmem:[%s1167_s5 + $0x90] sm:$0xff]  ;;  %v338_v8 = vld [vmem:[%s1167_s5 + $0x108] sm:$0xff] }
  0x1d   :  { %653 = vmatprep.subr.mxu0 %v328_v56  ;;  %v357_v56 = vld [vmem:[%s1167_s5 + $0x1a0] sm:$0xff] }
  0x1e   :  { %654 = vmatpush3.msra.mxu0 %v312_v57  ;;  %v307_v57 = vld [vmem:[%s1167_s5 + $0x10] sm:$0xff] }
  0x1f   :  { %655 = vmatprep.subr.mxu0 %v327_v58  ;;  %v341_v58 = vld [vmem:[%s1167_s5 + $0x120] sm:$0xff] }
  0x20   :  { %656 = vmatpush3.msra.mxu0 %v311_v59  ;;  %v322_v59 = vld [vmem:[%s1167_s5 + $0x88] sm:$0xff] }
  0x21   :  { %657 = vmatprep.subr.mxu0 %v326_v60  ;;  %v356_v60 = vld [vmem:[%s1167_s5 + $0x198] sm:$0xff] }
  0x22   :  { %658 = vmatpush3.msra.mxu0 %v310_v61  ;;  %v306_v61 = vld [vmem:[%s1167_s5 + $0x8] sm:$0xff] }
  0x23   :  { %659 = vmatprep.subr.mxu0 %v325_v62  ;;  %v340_v62 = vld [vmem:[%s1167_s5 + $0x118] sm:$0xff] }
  0x24   :  { %660 = vmatpush3.msra.mxu0 %v309_v63  ;;  %v321_v63 = vld [vmem:[%s1167_s5 + $0x80] sm:$0xff] }
  0x25   :  { %661 = vmatprep.subr.mxu0 %v324_v51 }
  0x26   :  { %662 = vmatpush3.msra.mxu0 %v308_v53 }
  0x27   :  { %663 = vmatprep.subr.mxu0 %v323_v55 }
  0x28   :  { %664 = vmatpush3.msra.mxu0 %v307_v57 }
  0x29   :  { %665 = vmatprep.subr.mxu0 %v322_v59 }
  0x2a   :  { %87 = vperm.xlu0 %754, %v630_v33   ;;  %v351_v33 = vld [vmem:[%s1167_s5 + $0x170] sm:$0xff]  ;;  %666 = vmatpush3.msra.mxu0 %v306_v61 }
  0x2b   :  { %667 = vmatprep.subr.mxu0 %v321_v63 }
  0x99   :  { %v67_v0 = vpop.xlane.xlu0 %66 }
  0x9a   :  { %v75_v2 = vpop.xlane.xlu1 %74 }
  0x9d   :  { %v71_v5 = vpop.xlane.xlu0 %70 }
  0x9e   :  { %v79_v9 = vpop.xlane.xlu1 %78 }
  0xa5   :  { %v88_v12 = vpop.permute.xlu0 %87 }
  0xa6   :  { %v90_v13 = vadd.f32 %v88_v12, %v67_v0  ;;  %v91_v14 = vadd.f32 %v88_v12, %v71_v5  ;;  %v92_v15 = vadd.f32 %v88_v12, %v75_v2  ;;  %v93_v16 = vadd.f32 %v88_v12, %v79_v9  ;;  %v355_v0 = vld [vmem:[%s1167_s5 + $0x190] sm:$0xff]  ;;  %v305_v2 = vld [vmem:[%s1167_s5] sm:$0xff]  ;;  %v354_v5 = vld [vmem:[%s1167_s5 + $0x188] sm:$0xff] }
  0xa7   :  { %668 = vmatpush3.msra.mxu0 %v305_v2  ;;  %v353_v9 = vld [vmem:[%s1167_s5 + $0x180] sm:$0xff] }
  0xa8   :  { %v94_v17 = vmax.f32 %v90_v13, 0.0  ;;  %v95_v18 = vmax.f32 %v91_v14, 0.0  ;;  %v96_v19 = vmax.f32 %v92_v15, 0.0  ;;  %v97_v20 = vmax.f32 %v93_v16, 0.0  ;;  %721 = vmatprep.subr.mxu0 %v778_v38 }
  0xa9   :  { %v118_v13 = vsub.s32 2, %v835_v3  ;;  %v122_v14 = vsub.s32 3, %v835_v3  ;;  %v528_v3 = vld [vmem:[%s1169_s7 + $0x58] sm:$0xff] }
  0xaa   :  { %v137_v21 = vrot.slane %v94_v17, %v136_v10  ;;  %v142_v1 = vrot.slane %v95_v18, %v141_v11  ;;  %v148_v22 = vrot.slane %v96_v19, %v136_v10  ;;  %v152_v23 = vrot.slane %v97_v20, %v141_v11  ;;  %v337_v10 = vld [vmem:[%s1167_s5 + $0x100] sm:$0xff] }
  0xab   :  { %v106_v11 = vld [vmem:[%s1166_s4] sm:$0xf] }
  0xac   :  { %v144_v24 = vsel %vm143_vm1, %v142_v1, %v137_v21  ;;  %v153_v25 = vsel %vm143_vm1, %v152_v23, %v148_v22  ;;  %v111_v12 = vrot.slane %v106_v11, %v47_v6  ;;  %v115_v15 = vrot.slane %v106_v11, %v51_v7  ;;  %v529_v6 = vld [vmem:[%s1169_s7 + $0x60] sm:$0xf] }
  0xad   :  { %v155_v27 = vsel %vm154_vm2, %v153_v25, %v144_v24  ;;  %v119_v19 = vrot.slane %v106_v11, %v118_v13  ;;  %v123_v20 = vrot.slane %v106_v11, %v122_v14 }
  0xae   :  { %631 = vmatmul.mubr.msk.f32.vlgmr.msra.gmra.mxu1 %vm156_vm3, %v155_v27 }
  0xaf   :  { %259 = vmatpush1.msra.mxu1 %v104_v26  ;;  %294 = vmatprep.mubr.f32.mxu1 %v778_v38 }
  0xb0   :  { %260 = vmatprep.subr.mxu1 %v101_v28  ;;  %v527_v28 = vld [vmem:[%s1169_s7 + $0x50] sm:$0xff] }
  0xb1   :  { %261 = vmatpush1.msra.mxu1 %v100_v29  ;;  %v526_v29 = vld [vmem:[%s1169_s7 + $0x48] sm:$0xff] }
  0xb2   :  { %632 = vmatmul.mubr.msk.f32.vlgmr.msra.gmra.mxu1 %vm156_vm3, %v155_v27  ;;  %672 = vmatprep.subr.mxu1 %v368_v30  ;;  %v525_v30 = vld [vmem:[%s1169_s7 + $0x40] sm:$0xff] }
  0xb3   :  { %673 = vmatpush3.msra.mxu1 %v352_v31  ;;  %v524_v31 = vld [vmem:[%s1169_s7 + $0x38] sm:$0xff] }
  0xb4   :  { %674 = vmatprep.subr.mxu1 %v367_v32  ;;  %v523_v32 = vld [vmem:[%s1169_s7 + $0x30] sm:$0xff] }
  0xb5   :  { %675 = vmatpush3.msra.mxu1 %v351_v33  ;;  %v522_v33 = vld [vmem:[%s1169_s7 + $0x28] sm:$0xff] }
  0xb6   :  { %676 = vmatprep.subr.mxu1 %v366_v34  ;;  %v521_v34 = vld [vmem:[%s1169_s7 + $0x20] sm:$0xff] }
  0xb7   :  { %677 = vmatpush3.msra.mxu1 %v350_v35  ;;  %v520_v35 = vld [vmem:[%s1169_s7 + $0x18] sm:$0xff] }
  0xb8   :  { %678 = vmatprep.subr.mxu1 %v365_v36  ;;  %v519_v36 = vld [vmem:[%s1169_s7 + $0x10] sm:$0xff] }
  0xb9   :  { %679 = vmatpush3.msra.mxu1 %v349_v37  ;;  %v518_v37 = vld [vmem:[%s1169_s7 + $0x8] sm:$0xff] }
  0xba   :  { %680 = vmatprep.subr.mxu1 %v364_v39  ;;  %v517_v39 = vld [vmem:[%s1169_s7] sm:$0xff] }
  0xbb   :  { %681 = vmatpush3.msra.mxu1 %v348_v40 }
  0xbc   :  { %682 = vmatprep.subr.mxu1 %v363_v41 }
  0xbd   :  { %683 = vmatpush3.msra.mxu1 %v347_v42 }
  0xbe   :  { %684 = vmatprep.subr.mxu1 %v362_v43  ;;  %v633_v43 = vld [vmem:[%s1168_s6] ss:$0 sm:$0xff]  ;;  %s755_s6 = scalar_lea.vmem %s623_s26, 32 }
  0xbf   :  { %685 = vmatpush3.msra.mxu1 %v346_v44  ;;  %p756_p0 = scmp.ne.s32.totalorder %s623_s26, %s755_s6  ;;  %p761_p2 = scmp.lt.s32.totalorder %s755_s6, %s755_s6 }
  0xc0   :  { %686 = vmatprep.subr.mxu1 %v361_v45 }
  0xc1   :  { %687 = vmatpush3.msra.mxu1 %v345_v46  ;;  %p762_p3 = por %p761_p2, %p760_p1 }
  0xc2   :  { %688 = vmatprep.subr.mxu1 %v360_v47 }
  0xc3   :  { %689 = vmatpush3.msra.mxu1 %v344_v48  ;;  %p763_p4 = pnand %p762_p3, %p756_p0 }
  0xc4   :  { %690 = vmatprep.subr.mxu1 %v359_v49 }
  0xc5   :  { %691 = vmatpush3.msra.mxu1 %v343_v50  ;;  %v634_v50 = vld [vmem:[%s1170_s8] ss:$0 sm:$0xff] }
  0xc6   :  { %692 = vmatprep.subr.mxu1 %v358_v52 }
  0xc7   :  { %693 = vmatpush3.msra.mxu1 %v342_v54 }
  0xc8   :  { %694 = vmatprep.subr.mxu1 %v357_v56 }
  0xc9   :  { %695 = vmatpush3.msra.mxu1 %v341_v58 }
  0xca   :  { %696 = vmatprep.subr.mxu1 %v356_v60 }
  0xcb   :  { %697 = vmatpush3.msra.mxu1 %v340_v62 }
  0xcc   :  { %698 = vmatprep.subr.mxu1 %v355_v0 }
  0xcd   :  { %699 = vmatpush3.msra.mxu1 %v339_v4 }
  0xce   :  { %700 = vmatprep.subr.mxu1 %v354_v5 }
  0xcf   :  { %701 = vmatpush3.msra.mxu1 %v338_v8 }
  0xd0   :  { %702 = vmatprep.subr.mxu1 %v353_v9 }
  0xd1   :  { %703 = vmatpush3.msra.mxu1 %v337_v10 }
 0x16e   :  { %v225_v16 = vpop.f32.mrf.mxu1 }
 0x16f   :  { %v226_v17 = vadd.f32 %v225_v16, %v111_v12 }
 0x170   :  { %v227_v18 = vpop.f32.mrf.mxu1 }
 0x171   :  { %v228_v21 = vadd.f32 %v227_v18, %v115_v15  ;;  %v301_v23 = vmax.f32 %v226_v17, 0.0 }
 0x172   :  { %v296_v1 = vpop.f32.mrf.mxu1 }
 0x173   :  { %v302_v22 = vmax.f32 %v228_v21, 0.0  ;;  %v297_v24 = vadd.f32 %v296_v1, %v119_v19 }
 0x174   :  { %v298_v25 = vpop.f32.mrf.mxu1 }
 0x175   :  { %v299_v26 = vadd.f32 %v298_v25, %v123_v20  ;;  %440 = vmatprep.mubr.f32.mxu0 %v302_v22  ;;  %v303_v27 = vmax.f32 %v297_v24, 0.0 }
 0x176   :  { %441 = vmatmul.mubr.f32.vlgmr.msra.gmra.mxu0 %v301_v23 }
 0x177   :  { %v304_v7 = vmax.f32 %v299_v26, 0.0  ;;  %722 = vmatpush3.msk.msra.mxu0 %vm541_vm4, %v529_v6  ;;  %747 = vmatprep.mubr.msk.f32.mxu0 %vm779_vm5, %v778_v38 }
 0x178   :  { %723 = vmatprep.subr.mxu0 %v778_v38 }
 0x179   :  { %510 = vmatprep.mubr.f32.mxu1 %v304_v7  ;;  %724 = vmatpush3.msra.mxu0 %v528_v3 }
 0x17a   :  { %511 = vmatmul.mubr.f32.vlgmr.msra.gmra.mxu1 %v303_v27  ;;  %725 = vmatprep.subr.mxu0 %v778_v38 }
 0x17b   :  { %726 = vmatpush3.msra.mxu0 %v527_v28 }
 0x17c   :  { %727 = vmatprep.subr.mxu0 %v778_v38 }
 0x17d   :  { %728 = vmatpush3.msra.mxu0 %v526_v29 }
 0x17e   :  { %729 = vmatprep.subr.mxu0 %v778_v38 }
 0x17f   :  { %730 = vmatpush3.msra.mxu0 %v525_v30 }
 0x180   :  { %731 = vmatprep.subr.mxu0 %v778_v38 }
 0x181   :  { %732 = vmatpush3.msra.mxu0 %v524_v31 }
 0x182   :  { %733 = vmatprep.subr.mxu0 %v778_v38 }
 0x183   :  { %734 = vmatpush3.msra.mxu0 %v523_v32 }
 0x184   :  { %735 = vmatprep.subr.mxu0 %v778_v38 }
 0x185   :  { %736 = vmatpush3.msra.mxu0 %v522_v33 }
 0x186   :  { %737 = vmatprep.subr.mxu0 %v778_v38 }
 0x187   :  { %738 = vmatpush3.msra.mxu0 %v521_v34 }
 0x188   :  { %739 = vmatprep.subr.mxu0 %v778_v38 }
 0x189   :  { %740 = vmatpush3.msra.mxu0 %v520_v35 }
 0x18a   :  { %741 = vmatprep.subr.mxu0 %v778_v38 }
 0x18b   :  { %742 = vmatpush3.msra.mxu0 %v519_v36 }
 0x18c   :  { %743 = vmatprep.subr.mxu0 %v778_v38 }
 0x18d   :  { %744 = vmatpush3.msra.mxu0 %v518_v37 }
 0x18e   :  { %745 = vmatprep.subr.mxu0 %v778_v38 }
 0x18f   :  { %746 = vmatpush3.msra.mxu0 %v517_v39 }
 0x236   :  { %v669_v40 = vpop.f32.mrf.mxu0 }
 0x238   :  { %v670_v41 = vpop.f32.mrf.mxu0 }
 0x239   :  { %v671_v42 = vadd.f32 %v670_v41, %v669_v40 }
 0x23a   :  { %v704_v44 = vpop.f32.mrf.mxu1 }
 0x23b   :  { %v443_v46 = vadd.f32 %v671_v42, %v633_v43 }
 0x23c   :  { %v705_v45 = vpop.f32.mrf.mxu1 }
 0x23d   :  { %v706_v47 = vadd.f32 %v705_v45, %v704_v44 }
 0x23f   :  { %v513_v48 = vadd.f32 %v706_v47, %v443_v46 }
 0x241   :  { %v516_v49 = vmax.f32 %v513_v48, 0.0 }
 0x243   :  { %748 = vmatmul.mubr.msk.f32.vlgmr.msra.gmra.mxu0 %vm537_vm6, %v516_v49 }
 0x303   :  { %v611_v38 = vpop.f32.mrf.mxu0 }
 0x304   :  { %v612_v51 = vadd.f32 %v634_v50, %v611_v38 }
 0x305   :  { %v749_v52 = vpop.f32.mrf.mxu0 }
 0x306   :  { %615 = vst [vmem:[#allocation3] sm:$0x3] %v612_v51 }
 0x307   :  { %766 = shalt.err (!%p763_p4)
}
 0x308   :  { %625 = dma.vmem_to_hbm [thread:$0]  %s623_s26, 32, %s1171_s9, [#allocation4]  }
 0x309   :  { %775 = dma.done.wait [#allocation4], 32  }
 0x30a   :  { %776 = vsyncadd [#allocation4], 4294967264 }
 0x30b   :  { %629 = vsyncpa [#allocation4], 1 }

</bundles_post_ra>
